<compile_context>
chip_gen: v7x
topology: tpu7x:2x2x1
jax: 0.10.0
libtpu: 0.0.40
codegen_flags: <defaults>
</compile_context>

<pallas_src>
import functools

import numpy as np

import jax
import jax.numpy as jnp
from jax import lax
from jax.experimental import pallas as pl
from jax.experimental.pallas import tpu as pltpu

# Large finite negative instead of -inf: identical results (exp underflows to
# exactly 0) but robust if padding/segment masks are ever added.
_MASK_VALUE = -0.7 * float(np.finfo(np.float32).max)


def _qkv_proj_kernel(x_ref, w_ref, qkv_ref):
    """Fused QKV projection with a single lane-dense output store.

    x_ref   : (tr, d_in)        rows of the flattened (B*T, d_in) input
    w_ref   : (d_in, 3*d_pad)   [Wq*scale | Wk | Wv] (zero-padded columns)
    qkv_ref : (tr, 3*d_pad)     fused output (Q comes out pre-scaled)
    """
    qkv_ref[...] = jnp.dot(
        x_ref[...], w_ref[...], preferred_element_type=jnp.float32
    ).astype(qkv_ref.dtype)


def _flash_causal_kernel(qi_ref, ki_ref, q_ref, k_ref, v_ref, o_ref,
                         m_scr, l_scr, acc_scr, *, tq, tk, approx_reciprocal):
    """Online-softmax causal attention over a lower-triangular tile schedule.

    qi_ref/ki_ref : (n_steps,) int32 SMEM schedule (scalar-prefetched)
    q_ref : (1, tq, d_pad)  pre-scaled queries
    k_ref : (1, tk, d_pad)
    v_ref : (1, tk, d_pad)
    o_ref : (1, tq, d_pad)
    m/l   : (tq, 1) f32 running max / denominator ; acc : (tq, d_pad) f32.
    """
    step = pl.program_id(1)
    qi = qi_ref[step]
    ki = ki_ref[step]
    # Last kv tile visible to this query tile (schedule only visits ki <= last).
    last_ki = ((qi + 1) * tq - 1) // tk

    @pl.when(ki == 0)
    def _init():
        m_scr[...] = jnp.full(m_scr.shape, _MASK_VALUE, jnp.float32)
        l_scr[...] = jnp.zeros(l_scr.shape, jnp.float32)
        acc_scr[...] = jnp.zeros(acc_scr.shape, jnp.float32)

    def _update(apply_mask):
        def body():
            q = q_ref[0]                                  # (tq, d_pad), pre-scaled
            k = k_ref[0]                                  # (tk, d_pad)
            # Q @ K^T by contracting last dims -> no XLU transpose of K.
            s = lax.dot_general(q, k, (((1,), (1,)), ((), ())),
                                preferred_element_type=jnp.float32)  # (tq, tk)
            if apply_mask:
                row = qi * tq + lax.broadcasted_iota(jnp.int32, (tq, tk), 0)
                col = ki * tk + lax.broadcasted_iota(jnp.int32, (tq, tk), 1)
                s = jnp.where(col > row, _MASK_VALUE, s)
            m_prev = m_scr[...]
            m_new = jnp.maximum(m_prev, jnp.max(s, axis=-1, keepdims=True))
            alpha = jnp.exp(m_prev - m_new)               # f32 softmax math (EUP)
            p = jnp.exp(s - m_new)
            l_scr[...] = alpha * l_scr[...] + jnp.sum(p, axis=-1, keepdims=True)
            acc_scr[...] = alpha * acc_scr[...] + jnp.dot(
                p.astype(v_ref.dtype), v_ref[0],
                preferred_element_type=jnp.float32)
            m_scr[...] = m_new
        return body

    # Only diagonal-straddling tiles pay for the mask (iota/compare/where);
    # fully-visible tiles take the unmasked path. Fully-masked tiles are never
    # in the schedule.
    needs_mask = (ki * tk + (tk - 1)) > (qi * tq)
    pl.when(needs_mask)(_update(True))
    pl.when(jnp.logical_not(needs_mask))(_update(False))

    @pl.when(ki == last_ki)
    def _finalize():
        # Causal-only: every query row has seen >= 1 unmasked key (ki=0 tile),
        # so l > 0 always. If padding/segment masks are ever added, guard with
        # jnp.where(l == 0, 0, acc * inv_l).
        inv_l = pl.reciprocal(l_scr[...], approx=approx_reciprocal)
        o_ref[0] = (acc_scr[...] * inv_l).astype(o_ref.dtype)


def causal_attention(x, w_query, w_key, w_value, *,
                     mxu_dtype=None, approx_reciprocal=None,
                     tq=128, tk=128, vmem_limit_bytes=32 * 1024 * 1024):
    """Forward pass of the PyTorch `CausalAttention` module (eval mode).

    x: (B, T, d_in); w_*: (d_out, d_in) nn.Linear weights (bias=False).
    mxu_dtype: dtype fed to the MXU matmuls (accumulation is always f32).
               None -> x.dtype. Pass jnp.bfloat16 for the fast MXU path.
    approx_reciprocal: None -> True iff the MXU path is lower precision than f32.
    tq, tk: attention tile sizes. 128 saturates v5e's 4x128^2 MXU; on v6e/v7x
            pass 256 (2x256^2 MXU). On v7x keep vmem_limit_bytes <= ~48 MiB.
    """
    B, T, d_in = x.shape
    d_out = w_query.shape[0]
    mxu_dtype = np.dtype(x.dtype if mxu_dtype is None else mxu_dtype)
    if approx_reciprocal is None:
        approx_reciprocal = mxu_dtype != np.dtype(np.float32)

    # Lane-dense head dim: pad d_out up to a multiple of 128. Zero columns in
    # Q/K leave QK^T unchanged; zero columns in V give zero output columns
    # that are sliced off below.
    d_pad = max(128, -(-d_out // 128) * 128)
    scale = 1.0 / (d_out ** 0.5)

    def _pad_cols(w_t):  # (d_in, d_out) -> (d_in, d_pad)
        if d_pad == d_out:
            return w_t
        return jnp.pad(w_t, ((0, 0), (0, d_pad - d_out)))

    # Fused QKV weight with the softmax scale folded into the Q columns so the
    # kernel never scales scores (O(T^2)) or Q (O(T*d_out)).
    w_qkv = jnp.concatenate(
        [_pad_cols(w_query.T.astype(jnp.float32) * scale),
         _pad_cols(w_key.T.astype(jnp.float32)),
         _pad_cols(w_value.T.astype(jnp.float32))],
        axis=1).astype(mxu_dtype)                         # (d_in, 3*d_pad)

    # ---------------- Stage 1: fused QKV projection, single lane-dense output.
    rows = B * T
    x_rows = x.reshape(rows, d_in).astype(mxu_dtype)
    tr = min(rows, 512)            # large row blocks amortize per-step overhead
    n_row_tiles = pl.cdiv(rows, tr)

    itemsize = mxu_dtype.itemsize
    proj_cost = pl.CostEstimate(
        flops=2 * rows * d_in * 3 * d_pad,
        transcendentals=0,
        bytes_accessed=int((rows * d_in + d_in * 3 * d_pad
                            + rows * 3 * d_pad) * itemsize))

    qkv = pl.pallas_call(
        _qkv_proj_kernel,
        out_shape=jax.ShapeDtypeStruct((rows, 3 * d_pad), mxu_dtype),
        grid_spec=pltpu.PrefetchScalarGridSpec(
            num_scalar_prefetch=0,
            grid=(n_row_tiles,),
            in_specs=[pl.BlockSpec((tr, d_in), lambda r: (r, 0)),
                      pl.BlockSpec((d_in, 3 * d_pad), lambda r: (0, 0))],
            out_specs=pl.BlockSpec((tr, 3 * d_pad), lambda r: (r, 0)),
        ),
        compiler_params=pltpu.CompilerParams(
            dimension_semantics=("parallel",),
            vmem_limit_bytes=vmem_limit_bytes),
        cost_estimate=proj_cost,
    )(x_rows, w_qkv)

    qkv = qkv.reshape(B, T, 3 * d_pad)

    # ---------------- Stage 2: flash causal attention, triangular schedule.
    tq = min(tq, T)
    tk = min(tk, T)
    assert T % tq == 0 and T % tk == 0, "seq length must be divisible by tq/tk"
    n_q = T // tq

    # Lower-triangular (qi, ki) schedule: only kv tiles that are at least
    # partially visible to the query tile are visited (no wasted grid steps,
    # no wasted K/V DMA for fully-masked tiles).
    sched_q, sched_k = [], []
    for qi_i in range(n_q):
        last_ki = ((qi_i + 1) * tq - 1) // tk
        for ki_i in range(last_ki + 1):
            sched_q.append(qi_i)
            sched_k.append(ki_i)
    n_steps = len(sched_q)
    qi_map = jnp.asarray(sched_q, dtype=jnp.int32)
    ki_map = jnp.asarray(sched_k, dtype=jnp.int32)

    flash_cost = pl.CostEstimate(
        flops=4 * B * n_steps * tq * tk * d_pad,          # QK^T + PV (causal)
        transcendentals=B * n_steps * tq * tk,            # exp
        bytes_accessed=int((B * n_q * tq * d_pad
                            + 2 * B * n_steps * tk * d_pad) * itemsize
                           + B * T * d_pad * np.dtype(x.dtype).itemsize))

    # TODO(synk): if xprof shows exposed DMA waits (tiny K/V tiles), add
    # pipeline_mode=pl.Buffered(3) on the K/V BlockSpecs.
    out = pl.pallas_call(
        functools.partial(_flash_causal_kernel, tq=tq, tk=tk,
                          approx_reciprocal=approx_reciprocal),
        out_shape=jax.ShapeDtypeStruct((B, T, d_pad), x.dtype),
        grid_spec=pltpu.PrefetchScalarGridSpec(
            num_scalar_prefetch=2,
            grid=(B, n_steps),
            # Q/K/V are carved out of the single fused QKV slab via the
            # last-dim block index (0 = Q, 1 = K, 2 = V) — no narrow stores.
            in_specs=[
                pl.BlockSpec((1, tq, d_pad), lambda b, s, qm, km: (b, qm[s], 0)),
                pl.BlockSpec((1, tk, d_pad), lambda b, s, qm, km: (b, km[s], 1)),
                pl.BlockSpec((1, tk, d_pad), lambda b, s, qm, km: (b, km[s], 2)),
            ],
            out_specs=pl.BlockSpec((1, tq, d_pad),
                                   lambda b, s, qm, km: (b, qm[s], 0)),
            scratch_shapes=[pltpu.VMEM((tq, 1), jnp.float32),       # m
                            pltpu.VMEM((tq, 1), jnp.float32),       # l
                            pltpu.VMEM((tq, d_pad), jnp.float32)],  # acc
        ),
        compiler_params=pltpu.CompilerParams(
            # TODO(synk): on v7x (2 TCs) the only parallel extent is B; if B==1
            # consider splitting the schedule per-core for load balance.
            dimension_semantics=("parallel", "arbitrary"),
            vmem_limit_bytes=vmem_limit_bytes),
        cost_estimate=flash_cost,
    )(qi_map, ki_map, qkv, qkv, qkv)

    # TODO(synk): nn.Dropout on attn_weights only acts in training mode; this
    # kernel reproduces eval / p=0.0 semantics (no dropout applied).
    return out[:, :, :d_out]


def _reference(x, w_query, w_key, w_value):
    """Pure-JAX reference mirroring the PyTorch forward (eval mode)."""
    q = x @ w_query.T
    k = x @ w_key.T
    v = x @ w_value.T
    scores = jnp.einsum("btd,bsd->bts", q, k)
    T = x.shape[1]
    mask = jnp.triu(jnp.ones((T, T), dtype=bool), k=1)
    scores = jnp.where(mask[None, :, :], -jnp.inf, scores)
    attn = jax.nn.softmax(scores / (k.shape[-1] ** 0.5), axis=-1)
    return attn @ v


if __name__ == "__main__":
    # Module hyperparameters (deterministic, in-script).
    batch, seq, d_in, d_out = 2, 8, 32, 16

    key = jax.random.PRNGKey(0)
    kx, kq, kk, kv = jax.random.split(key, 4)

    x = jax.random.normal(kx, (batch, seq, d_in), dtype=jnp.float32)
    # nn.Linear(d_in, d_out) weights: shape (d_out, d_in)
    w_query = jax.random.normal(kq, (d_out, d_in), dtype=jnp.float32) * 0.1
    w_key = jax.random.normal(kk, (d_out, d_in), dtype=jnp.float32) * 0.1
    w_value = jax.random.normal(kv, (d_out, d_in), dtype=jnp.float32) * 0.1

    ref = _reference(x, w_query, w_key, w_value)

    # Strict f32 path: exact module semantics (f32 MXU inputs, exact reciprocal).
    out_f32 = causal_attention(x, w_query, w_key, w_value,
                               mxu_dtype=jnp.float32, approx_reciprocal=False)
    out_f32 = jax.block_until_ready(out_f32)
    assert out_f32.shape == (batch, seq, d_out)
    assert jnp.allclose(out_f32, ref, atol=1e-4, rtol=1e-4), (
        "f32 path mismatch, max abs err = %e"
        % float(jnp.max(jnp.abs(out_f32 - ref))))

    # Fast path: bf16 MXU inputs + f32 accumulation + approx reciprocal.
    out_bf16 = causal_attention(x, w_query, w_key, w_value,
                                mxu_dtype=jnp.bfloat16)
    out_bf16 = jax.block_until_ready(out_bf16)
    assert out_bf16.shape == (batch, seq, d_out)
    assert jnp.allclose(out_bf16.astype(jnp.float32), ref, atol=3e-2, rtol=3e-2), (
        "bf16 path mismatch, max abs err = %e"
        % float(jnp.max(jnp.abs(out_bf16.astype(jnp.float32) - ref))))

    print("KERNEL_OK")
</pallas_src>

<mosaic_0001>
module attributes {stable_mosaic.version = 11 : i64} {
  func.func @_qkv_proj_kernel(%arg0: i32, %arg1: memref<16x32xf32, #tpu.memory_space<vmem>>, %arg2: memref<32x384xf32, #tpu.memory_space<vmem>>, %arg3: memref<16x384xf32, #tpu.memory_space<vmem>>) attributes {dimension_semantics = [#tpu.dimension_semantics<parallel>], iteration_bounds = array<i64: 1>, scalar_prefetch = 0 : i64, scratch_operands = 0 : i64, tpu.core_type = #tpu.core_type<tc>, window_params = [{transform_indices = @transform_0, window_bounds = array<i64: 16, 32>}, {pipeline_mode = #tpu.pipeline_mode<synchronous>, transform_indices = @transform_1, window_bounds = array<i64: 32, 384>}, {transform_indices = @transform_2, window_bounds = array<i64: 16, 384>}]} {
    %c0 = arith.constant 0 : index
    %c0_0 = arith.constant 0 : index
    %0 = vector.load %arg1[%c0, %c0_0] : memref<16x32xf32, #tpu.memory_space<vmem>>, vector<16x32xf32>
    %c0_1 = arith.constant 0 : index
    %c0_2 = arith.constant 0 : index
    %1 = vector.load %arg2[%c0_1, %c0_2] : memref<32x384xf32, #tpu.memory_space<vmem>>, vector<32x384xf32>
    %cst = arith.constant dense<0.000000e+00> : vector<16x384xf32>
    %2 = tpu.matmul %0, %1, %cst {dimension_numbers = #tpu.dot_dimension_numbers<[1], [0], [0], [1], [0, 0, 1, 1], [], []>} : vector<16x32xf32>, vector<32x384xf32>, vector<16x384xf32> -> vector<16x384xf32>
    %c0_3 = arith.constant 0 : index
    %c0_4 = arith.constant 0 : index
    %3 = vector.load %arg3[%c0_3, %c0_4] : memref<16x384xf32, #tpu.memory_space<vmem>>, vector<16x384xf32>
    tpu.vector_store %arg3[%c0_3, %c0_4], %2 {strides = array<i32>} : memref<16x384xf32, #tpu.memory_space<vmem>>, vector<16x384xf32>,
    return
  }
  func.func @transform_0(%arg0: i32) -> (i32, i32) {
    %c0_i32 = arith.constant 0 : i32
    %c0_i32_0 = arith.constant 0 : i32
    return %arg0, %c0_i32 : i32, i32
  }
  func.func @transform_1(%arg0: i32) -> (i32, i32) {
    %c0_i32 = arith.constant 0 : i32
    %c0_i32_0 = arith.constant 0 : i32
    %c0_i32_1 = arith.constant 0 : i32
    return %c0_i32, %c0_i32_0 : i32, i32
  }
  func.func @transform_2(%arg0: i32) -> (i32, i32) {
    %c0_i32 = arith.constant 0 : i32
    %c0_i32_0 = arith.constant 0 : i32
    return %arg0, %c0_i32 : i32, i32
  }
}

</mosaic_0001>

<bundles_post_ra>
// kernel: tpu_custom_call.1
= control target key start
LH: loop header
LB: loop body
LE: loop exit
PB: predicated region body
PF: predicated region fallthrough
CT: control target
= control target key end

     0   :  { %7 = vsyncpa [#allocation3], 0  ;;  %s419_s0 = inlined_call_operand.hbm [shape: f32[16,32], index: 0, kind: input, shape index: {}]   ;;  %s420_s1 = inlined_call_operand.hbm [shape: f32[32,384], index: 1, kind: input, shape index: {}]   ;;  %s421_s2 = inlined_call_operand.hbm [shape: f32[16,384], index: 2, kind: output, shape index: {}]  }
   0x1   :  { %8 = vsyncpa [#allocation6], 0 }
   0x2   :  { %9 = vsyncpa [#allocation4], 0  ;;  %s354_s9 = smov [#allocation2]   ;;  %s282_s13 = scalar_lea.hbm %s419_s0, 256 }
   0x3   :  { %s15_s10 = sshll.u32 %s354_s9, 4  ;;  %p283_p0 = scmp.ne.s32.totalorder %s419_s0, %s282_s13  ;;  %s16_s10 = int_to_ptr.vmem [resolvable:$true] %s15_s10 }
   0x4   :  { %p286_p1 = scmp.lt.u32.totalorder %s282_s13, %s419_s0 }
   0x6   :  { %p288_p2 = pnand %p286_p1, %p283_p0 }
   0x8   :  { %291 = shalt.err (!%p288_p2)
}
   0x9   :  { %s292_s18 = scalar_lea.vmem %s16_s10, 256  ;;  %p297_p4 = scmp.lt.s32.totalorder %s16_s10, %s16_s10 }
   0xa   :  { %p293_p3 = scmp.ne.s32.totalorder %s16_s10, %s292_s18  ;;  %p298_p5 = scmp.lt.s32.totalorder %s292_s18, %s292_s18 }
   0xc   :  { %p299_p6 = por %p298_p5, %p297_p4 }
   0xe   :  { %p300_p7 = pnand %p299_p6, %p293_p3 }
  0x10   :  { %303 = shalt.err (!%p300_p7)
}
  0x11   :  { %s355_s19 = smov 128   ;;  %s356_s20 = smov 8  }
  0x12   :  { %21 = dma.hbm_to_vmem [thread:$0]  %s419_s0, 256, %s16_s10, [#allocation3], %s355_s19, %s355_s19, %s356_s20  }
  0x13   :  { %s357_s23 = smov [#allocation5]   ;;  %s304_s27 = scalar_lea.hbm %s420_s1, 1536 }
  0x14   :  { %s27_s24 = sshll.u32 %s357_s23, 4  ;;  %p305_p8 = scmp.ne.s32.totalorder %s420_s1, %s304_s27  ;;  %s28_s24 = int_to_ptr.vmem [resolvable:$true] %s27_s24 }
  0x15   :  { %p308_p9 = scmp.lt.u32.totalorder %s304_s27, %s420_s1 }
  0x17   :  { %p310_p10 = pnand %p308_p9, %p305_p8 }
  0x19   :  { %313 = shalt.err (!%p310_p10)
}
  0x1a   :  { %s314_s4 = scalar_lea.vmem %s28_s24, 1536  ;;  %p319_p12 = scmp.lt.s32.totalorder %s28_s24, %s28_s24 }
  0x1b   :  { %p315_p11 = scmp.ne.s32.totalorder %s28_s24, %s314_s4  ;;  %p320_p13 = scmp.lt.s32.totalorder %s314_s4, %s314_s4 }
  0x1d   :  { %p321_p0 = por %p320_p13, %p319_p12 }
  0x1f   :  { %p322_p1 = pnand %p321_p0, %p315_p11 }
  0x21   :  { %325 = shalt.err (!%p322_p1)
}
  0x22   :  { %s358_s0 = smov 384   ;;  %s359_s5 = smov 24  }
  0x23   :  { %33 = dma.hbm_to_vmem [thread:$0]  %s420_s1, 1536, %s28_s24, [#allocation6], %s358_s0, %s358_s0, %s359_s5  }
  0x24   :  { %348 = dma.done.wait [#allocation3], 256  }
  0x25   :  { %349 = vsyncadd [#allocation3], 4294967040 }
  0x26   :  { %350 = dma.done.wait [#allocation6], 1536  }
  0x27   :  { %351 = vsyncadd [#allocation6], 4294965760  ;;  %v360_v0 = vmov 0.0   ;;  %v43_v1 = vld [vmem:[#allocation5 + $0x8] sm:$0xff]  ;;  %v46_v2 = vld [vmem:[#allocation5 + $0x20] sm:$0xff]  ;;  %vm54_vm0 = vcmask 261120  }
  0x28   :  { %125 = vmatprep.mubr.f32.mxu0 %v360_v0  ;;  %v42_v3 = vld [vmem:[#allocation5] sm:$0xff]  ;;  %v258_v4 = vpack.c.bf16 %v46_v2, %v43_v1  ;;  %v45_v5 = vld [vmem:[#allocation5 + $0x18] sm:$0xff]  ;;  %v44_v6 = vld [vmem:[#allocation5 + $0x10] sm:$0xff]  ;;  %s361_s1 = smov [#allocation7]  }
  0x29   :  { %v47_v7 = vld [vmem:[#allocation5 + $0x28] sm:$0xff]  ;;  %v260_v8 = vpack.c.bf16 %v45_v5, %v42_v3  ;;  %v49_v10 = vld [vmem:[#allocation5 + $0x38] sm:$0xff]  ;;  %v52_v11 = vld [vmem:[#allocation5 + $0x50] sm:$0xff]  ;;  %s224_s8 = sshll.u32 %s361_s1, 4  ;;  %s225_s8 = int_to_ptr.vmem [resolvable:$true] %s224_s8 }
  0x2a   :  { %v266_v9 = vpack.c.bf16 %v47_v7, %v44_v6  ;;  %v48_v12 = vld [vmem:[#allocation5 + $0x30] sm:$0xff]  ;;  %259 = vmatprep.subr.bf16.mxu0 %v258_v4  ;;  %v262_v13 = vpack.c.bf16 %v52_v11, %v49_v10  ;;  %v51_v14 = vld [vmem:[#allocation5 + $0x48] sm:$0xff]  ;;  %v50_v15 = vld [vmem:[#allocation5 + $0x40] sm:$0xff]  ;;  %s326_s9 = scalar_lea.vmem %s225_s8, 768  ;;  %p331_p3 = scmp.lt.s32.totalorder %s225_s8, %s225_s8 }
  0x2b   :  { %v53_v16 = vld [vmem:[#allocation5 + $0x58] sm:$0xff]  ;;  %261 = vmatpush1.bf16.msra.mxu0 %v260_v8  ;;  %v264_v17 = vpack.c.bf16 %v51_v14, %v48_v12  ;;  %v40_v19 = vld [vmem:[#allocation2] sm:$0xff]  ;;  %p327_p2 = scmp.ne.s32.totalorder %s225_s8, %s326_s9  ;;  %p332_p4 = scmp.lt.s32.totalorder %s326_s9, %s326_s9 }
  0x2c   :  { %267 = vmatprep.subr.bf16.mxu1 %v266_v9  ;;  %v270_v18 = vpack.c.bf16 %v53_v16, %v50_v15  ;;  %263 = vmatprep.subr.bf16.mxu0 %v262_v13  ;;  %v41_v20 = vld [vmem:[#allocation2 + $0x8] sm:$0xff] }
  0x2d   :  { %269 = vmatpush3.bf16.msra.mxu1 %v266_v9  ;;  %255 = vmatprep.mubr.msk.f32.mxu1 %vm54_vm0, %v40_v19  ;;  %p333_p5 = por %p332_p4, %p331_p3 }
  0x2e   :  { %271 = vmatprep.subr.bf16.mxu1 %v270_v18 }
  0x2f   :  { %265 = vmatpush1.bf16.msra.mxu0 %v264_v17  ;;  %p334_p6 = pnand %p333_p5, %p327_p2 }
  0x31   :  { %273 = vmatpush3.bf16.msra.mxu1 %v270_v18 }
  0x32   :  { %237 = vmatmul.mubr.msk.f32.vlgmr.msra.gmra.mrb[0].mxu0 %vm54_vm0, %v40_v19 }
  0x33   :  { %131 = vmatprep.mubr.f32.mxu0 %v360_v0 }
  0x34   :  { %256 = vmatmul.mubr.msk.f32.vlgmr.msra.gmra.mrb[0].mxu1 %vm54_vm0, %v41_v20 }
  0x36   :  { %238 = vmatmul.mubr.msk.f32.gmra.mrb[2].mxu0 %vm54_vm0, %v41_v20 }
 0x105   :  { %v127_v21 = vpop.f32.mrb[0].mxu0 }
 0x106   :  { %213 = vst [vmem:[#allocation7] sm:$0xff] %v127_v21  ;;  %v129_v22 = vpop.f32.mrb[1].mxu0 }
 0x107   :  { %v257_v23 = vpop.f32.mrb[0].mxu1  ;;  %214 = vst [vmem:[#allocation7 + $0x8] sm:$0xff] %v129_v22 }
 0x108   :  { %218 = vst [vmem:[#allocation7 + $0x28] sm:$0xff] %v257_v23  ;;  %v204_v24 = vpop.f32.mrb[1].mxu1 }
 0x109   :  { %215 = vst [vmem:[#allocation7 + $0x10] sm:$0xff] %v204_v24  ;;  %v133_v25 = vpop.f32.mrb[2].mxu0 }
 0x10a   :  { %216 = vst [vmem:[#allocation7 + $0x18] sm:$0xff] %v133_v25  ;;  %v135_v26 = vpop.f32.mrb[3].mxu0 }
 0x10b   :  { %217 = vst [vmem:[#allocation7 + $0x20] sm:$0xff] %v135_v26 }
 0x10c   :  { %337 = shalt.err (!%p334_p6)
}
 0x10d   :  { %s338_s12 = scalar_lea.hbm %s421_s2, 768 }
 0x10e   :  { %p339_p7 = scmp.ne.s32.totalorder %s421_s2, %s338_s12  ;;  %p342_p8 = scmp.lt.u32.totalorder %s338_s12, %s421_s2 }
 0x110   :  { %p344_p9 = pnand %p342_p8, %p339_p7 }
 0x112   :  { %347 = shalt.err (!%p344_p9)
}
 0x113   :  { %230 = dma.vmem_to_hbm [thread:$0]  %s225_s8, 768, %s421_s2, [#allocation4], %s358_s0, %s358_s0, %s359_s5  }
 0x114   :  { %352 = dma.done.wait [#allocation4], 768  }
 0x115   :  { %353 = vsyncadd [#allocation4], 4294966528 }
 0x116   :  { %234 = vsyncpa [#allocation3], 1 }
 0x117   :  { %235 = vsyncpa [#allocation6], 1 }
 0x118   :  { %236 = vsyncpa [#allocation4], 1 }

</bundles_post_ra>
